<compile_context>
chip_gen: v5e
topology: v5e:2x2
jax: 0.10.0
libtpu: 0.0.40
codegen_flags: <defaults>
</compile_context>

<pallas_src>
import jax
import jax.numpy as jnp
from jax import lax
from jax.experimental import pallas as pl
from jax.experimental.pallas import tpu as pltpu

NUM_GROUPS = 8
EPS = 1e-5


def conv_fusion_kernel(x1_ref, x2_ref, x3_ref, w1a_ref, w1b_ref, w1c_ref,
                       w2_ref, p_ref, gmat_ref, o_ref):
    # x*_ref: (bblk, hidden, HW)   lane-dense per-sample slabs (matmul dtype)
    # w1a/b/c: (hidden, hidden)    column blocks of the first conv weight
    # w2:      (hidden, hidden)
    # p_ref:   (hidden, 4) fp32    columns = [b1, gamma, beta, b2]
    # gmat:    (hidden, hidden) fp32  gmat[c, c'] = 1 iff same GroupNorm group
    # o_ref:   (bblk, hidden, HW) fp32
    bblk, hidden, hw = o_ref.shape
    cpg = hidden // NUM_GROUPS
    inv_denom = 1.0 / float(hw * cpg)

    # Weights / params are loaded once per grid step and reused for all bblk samples.
    w1a = w1a_ref[...]
    w1b = w1b_ref[...]
    w1c = w1c_ref[...]
    w2 = w2_ref[...]
    gmat = gmat_ref[...]
    p = p_ref[...]
    b1 = p[:, 0:1]
    gamma = p[:, 1:2]
    beta = p[:, 2:3]
    b2 = p[:, 3:4]

    for b in range(bblk):  # static loop: samples share the resident weights
        x1 = x1_ref[b]
        x2 = x2_ref[b]
        x3 = x3_ref[b]

        # ---- 1x1 conv #1: fused concat via split-K accumulation (fp32 acc) ----
        y = (jnp.dot(w1a, x1, preferred_element_type=jnp.float32) +
             jnp.dot(w1b, x2, preferred_element_type=jnp.float32) +
             jnp.dot(w1c, x3, preferred_element_type=jnp.float32) + b1)  # (hidden, HW) fp32

        # ---- GroupNorm(8), two-pass, fp32 ----
        ch_sum = jnp.sum(y, axis=1, keepdims=True)                        # (hidden, 1)
        mean_c = jnp.dot(gmat, ch_sum,
                         preferred_element_type=jnp.float32) * inv_denom  # (hidden, 1)
        d = y - mean_c
        ch_var = jnp.sum(d * d, axis=1, keepdims=True)                    # (hidden, 1)
        var_c = jnp.dot(gmat, ch_var,
                        preferred_element_type=jnp.float32) * inv_denom   # (hidden, 1)
        scale = lax.rsqrt(var_c + EPS) * gamma
        yn = d * scale + beta

        # ---- ReLU ----
        yn = jnp.maximum(yn, 0.0)

        # ---- 1x1 conv #2 ----
        o_ref[b] = (jnp.dot(yn.astype(w2.dtype), w2.T if False else w2,
                            preferred_element_type=jnp.float32)
                    if False else
                    jnp.dot(w2, yn.astype(w2.dtype),
                            preferred_element_type=jnp.float32) + b2).astype(o_ref.dtype)


def _pick_bblk(batch):
    # Several samples per grid step amortize per-step overhead, but keep >= 2 grid
    # steps so the parallel batch axis can still shard across v7x's 2 TensorCores.
    for cand in (8, 4, 2):
        if batch % cand == 0 and batch // cand >= 2:
            return cand
    return 1


def _const2d(shape):
    return pl.BlockSpec(shape, lambda i: (0, 0))


def conv_fusion(x1, x2, x3, params, *, matmul_dtype=jnp.bfloat16, bblk=None):
    """x1, x2, x3: NCHW float32 tensors of shape (B, hidden, H, W)."""
    B, hidden, H, W = x1.shape
    HW = H * W
    assert hidden % NUM_GROUPS == 0

    if bblk is None:
        bblk = _pick_bblk(B)
    assert B % bblk == 0

    md = matmul_dtype
    # Free reshape only — NCHW per-sample slab is already lane-dense (C, H*W).
    xs = [v.reshape(B, hidden, HW).astype(md) for v in (x1, x2, x3)]

    # Conv weights in (out, in) layout; split the first conv column-wise to fuse the concat.
    w1 = params["w1"].astype(md)                       # (hidden, 3*hidden)
    w1a = w1[:, :hidden]
    w1b = w1[:, hidden:2 * hidden]
    w1c = w1[:, 2 * hidden:]
    w2 = params["w2"].astype(md)                       # (hidden, hidden)

    # Pack the four per-channel vectors into one (hidden, 4) fp32 array.
    pvec = jnp.stack(
        [params["b1"], params["gamma"], params["beta"], params["b2"]],
        axis=1).astype(jnp.float32)                    # (hidden, 4)

    # Same-group indicator matrix: folds per-channel stats to per-group and
    # broadcasts them back to per-channel in a single tiny matmul.
    cpg = hidden // NUM_GROUPS
    gid = jnp.arange(hidden) // cpg
    gmat = (gid[:, None] == gid[None, :]).astype(jnp.float32)   # (hidden, hidden)

    xspec = pl.BlockSpec((bblk, hidden, HW), lambda i: (i, 0, 0))

    out = pl.pallas_call(
        conv_fusion_kernel,
        out_shape=jax.ShapeDtypeStruct((B, hidden, HW), jnp.float32),
        grid=(B // bblk,),
        in_specs=[
            xspec, xspec, xspec,
            _const2d((hidden, hidden)),   # w1a
            _const2d((hidden, hidden)),   # w1b
            _const2d((hidden, hidden)),   # w1c
            _const2d((hidden, hidden)),   # w2
            _const2d((hidden, 4)),        # packed b1/gamma/beta/b2
            _const2d((hidden, hidden)),   # group-indicator matrix
        ],
        out_specs=pl.BlockSpec((bblk, hidden, HW), lambda i: (i, 0, 0)),
        compiler_params=pltpu.CompilerParams(dimension_semantics=("parallel",)),
    )(*xs, w1a, w1b, w1c, w2, pvec, gmat)

    # Free reshape back to NCHW (channels stayed on the leading per-sample axis).
    return out.reshape(B, hidden, H, W)


def reference(x1, x2, x3, params):
    """Pure-JAX fp32 reference reproducing the PyTorch forward (for validation)."""
    B, hidden, H, W = x1.shape
    HW = H * W
    x = jnp.concatenate([v.reshape(B, -1, HW) for v in (x1, x2, x3)], axis=1)  # (B, 3h, HW)
    y = jnp.einsum('oi,bis->bos', params["w1"], x) + params["b1"][None, :, None]
    yg = y.reshape(B, NUM_GROUPS, hidden // NUM_GROUPS, HW)
    mean = jnp.mean(yg, axis=(2, 3), keepdims=True)
    var = jnp.mean((yg - mean) ** 2, axis=(2, 3), keepdims=True)
    yn = ((yg - mean) / jnp.sqrt(var + EPS)).reshape(B, hidden, HW)
    yn = yn * params["gamma"][None, :, None] + params["beta"][None, :, None]
    yn = jnp.maximum(yn, 0.0)
    out = jnp.einsum('oi,bis->bos', params["w2"], yn) + params["b2"][None, :, None]
    return out.reshape(B, hidden, H, W)


def make_params(key, hidden):
    k1, k2, k3, k4 = jax.random.split(key, 4)
    # Conv2d weights are (out, in, 1, 1) in PyTorch; stored here as (out, in).
    w1 = jax.random.normal(k1, (hidden, 3 * hidden), jnp.float32) * 0.05
    b1 = jax.random.normal(k2, (hidden,), jnp.float32) * 0.05
    w2 = jax.random.normal(k3, (hidden, hidden), jnp.float32) * 0.05
    b2 = jax.random.normal(k4, (hidden,), jnp.float32) * 0.05
    # GroupNorm affine defaults: gamma=1, beta=0.
    gamma = jnp.ones((hidden,), jnp.float32)
    beta = jnp.zeros((hidden,), jnp.float32)
    return dict(w1=w1, b1=b1, w2=w2, b2=b2, gamma=gamma, beta=beta)


if __name__ == "__main__":
    batch, hidden, spatial = 2, 32, 16
    key = jax.random.PRNGKey(0)
    kx1, kx2, kx3, kp = jax.random.split(key, 4)
    shape = (batch, hidden, spatial, spatial)
    x1 = jax.random.normal(kx1, shape, jnp.float32)
    x2 = jax.random.normal(kx2, shape, jnp.float32)
    x3 = jax.random.normal(kx3, shape, jnp.float32)
    params = make_params(kp, hidden)

    ref = jax.block_until_ready(reference(x1, x2, x3, params))

    # Exact-semantics fp32 path (tight tolerance vs the PyTorch-equivalent reference).
    out_f32 = jax.block_until_ready(
        conv_fusion(x1, x2, x3, params, matmul_dtype=jnp.float32))
    assert out_f32.shape == shape
    assert jnp.allclose(out_f32, ref, atol=1e-4, rtol=1e-4), "fp32 mismatch vs reference"

    # Default fast path: bf16 MXU inputs, fp32 accumulation + fp32 GroupNorm.
    out = jax.block_until_ready(conv_fusion(x1, x2, x3, params))
    assert out.shape == shape
    assert jnp.allclose(out, ref, atol=3e-2, rtol=3e-2), "bf16 mismatch vs reference"

    print("KERNEL_OK")
</pallas_src>

<mosaic_0001>
module attributes {stable_mosaic.version = 11 : i64} {
  func.func @conv_fusion_kernel(%arg0: i32, %arg1: memref<1x32x256xf32, #tpu.memory_space<vmem>>, %arg2: memref<1x32x256xf32, #tpu.memory_space<vmem>>, %arg3: memref<1x32x256xf32, #tpu.memory_space<vmem>>, %arg4: memref<32x32xf32, #tpu.memory_space<vmem>>, %arg5: memref<32x32xf32, #tpu.memory_space<vmem>>, %arg6: memref<32x32xf32, #tpu.memory_space<vmem>>, %arg7: memref<32x32xf32, #tpu.memory_space<vmem>>, %arg8: memref<32x4xf32, #tpu.memory_space<vmem>>, %arg9: memref<32x32xf32, #tpu.memory_space<vmem>>, %arg10: memref<1x32x256xf32, #tpu.memory_space<vmem>>) attributes {dimension_semantics = [#tpu.dimension_semantics<parallel>], iteration_bounds = array<i64: 2>, scalar_prefetch = 0 : i64, scratch_operands = 0 : i64, tpu.core_type = #tpu.core_type<tc>, window_params = [{transform_indices = @transform_0, window_bounds = array<i64: 1, 32, 256>}, {transform_indices = @transform_1, window_bounds = array<i64: 1, 32, 256>}, {transform_indices = @transform_2, window_bounds = array<i64: 1, 32, 256>}, {pipeline_mode = #tpu.pipeline_mode<synchronous>, transform_indices = @transform_3, window_bounds = array<i64: 32, 32>}, {pipeline_mode = #tpu.pipeline_mode<synchronous>, transform_indices = @transform_4, window_bounds = array<i64: 32, 32>}, {pipeline_mode = #tpu.pipeline_mode<synchronous>, transform_indices = @transform_5, window_bounds = array<i64: 32, 32>}, {pipeline_mode = #tpu.pipeline_mode<synchronous>, transform_indices = @transform_6, window_bounds = array<i64: 32, 32>}, {pipeline_mode = #tpu.pipeline_mode<synchronous>, transform_indices = @transform_7, window_bounds = array<i64: 32, 4>}, {pipeline_mode = #tpu.pipeline_mode<synchronous>, transform_indices = @transform_8, window_bounds = array<i64: 32, 32>}, {transform_indices = @transform_9, window_bounds = array<i64: 1, 32, 256>}]} {
    %c0 = arith.constant 0 : index
    %c0_0 = arith.constant 0 : index
    %0 = vector.load %arg4[%c0, %c0_0] : memref<32x32xf32, #tpu.memory_space<vmem>>, vector<32x32xf32>
    %c0_1 = arith.constant 0 : index
    %c0_2 = arith.constant 0 : index
    %1 = vector.load %arg5[%c0_1, %c0_2] : memref<32x32xf32, #tpu.memory_space<vmem>>, vector<32x32xf32>
    %c0_3 = arith.constant 0 : index
    %c0_4 = arith.constant 0 : index
    %2 = vector.load %arg6[%c0_3, %c0_4] : memref<32x32xf32, #tpu.memory_space<vmem>>, vector<32x32xf32>
    %c0_5 = arith.constant 0 : index
    %c0_6 = arith.constant 0 : index
    %3 = vector.load %arg7[%c0_5, %c0_6] : memref<32x32xf32, #tpu.memory_space<vmem>>, vector<32x32xf32>
    %c0_7 = arith.constant 0 : index
    %c0_8 = arith.constant 0 : index
    %4 = vector.load %arg9[%c0_7, %c0_8] : memref<32x32xf32, #tpu.memory_space<vmem>>, vector<32x32xf32>
    %c0_9 = arith.constant 0 : index
    %c0_10 = arith.constant 0 : index
    %5 = vector.load %arg8[%c0_9, %c0_10] : memref<32x4xf32, #tpu.memory_space<vmem>>, vector<32x4xf32>
    %6 = vector.extract_strided_slice %5 {offsets = [0, 0], sizes = [32, 1], strides = [1, 1]} : vector<32x4xf32> to vector<32x1xf32>
    %7 = vector.extract_strided_slice %5 {offsets = [0, 1], sizes = [32, 1], strides = [1, 1]} : vector<32x4xf32> to vector<32x1xf32>
    %8 = vector.extract_strided_slice %5 {offsets = [0, 2], sizes = [32, 1], strides = [1, 1]} : vector<32x4xf32> to vector<32x1xf32>
    %9 = vector.extract_strided_slice %5 {offsets = [0, 3], sizes = [32, 1], strides = [1, 1]} : vector<32x4xf32> to vector<32x1xf32>
    %c0_11 = arith.constant 0 : index
    %c0_12 = arith.constant 0 : index
    %c0_13 = arith.constant 0 : index
    %10 = vector.load %arg1[%c0_11, %c0_12, %c0_13] : memref<1x32x256xf32, #tpu.memory_space<vmem>>, vector<1x32x256xf32>
    %11 = vector.shape_cast %10 : vector<1x32x256xf32> to vector<32x256xf32>
    %c0_14 = arith.constant 0 : index
    %c0_15 = arith.constant 0 : index
    %c0_16 = arith.constant 0 : index
    %12 = vector.load %arg2[%c0_14, %c0_15, %c0_16] : memref<1x32x256xf32, #tpu.memory_space<vmem>>, vector<1x32x256xf32>
    %13 = vector.shape_cast %12 : vector<1x32x256xf32> to vector<32x256xf32>
    %c0_17 = arith.constant 0 : index
    %c0_18 = arith.constant 0 : index
    %c0_19 = arith.constant 0 : index
    %14 = vector.load %arg3[%c0_17, %c0_18, %c0_19] : memref<1x32x256xf32, #tpu.memory_space<vmem>>, vector<1x32x256xf32>
    %15 = vector.shape_cast %14 : vector<1x32x256xf32> to vector<32x256xf32>
    %cst = arith.constant dense<0.000000e+00> : vector<32x256xf32>
    %16 = tpu.matmul %0, %11, %cst {dimension_numbers = #tpu.dot_dimension_numbers<[1], [0], [0], [1], [0, 0, 1, 1], [], []>} : vector<32x32xf32>, vector<32x256xf32>, vector<32x256xf32> -> vector<32x256xf32>
    %cst_20 = arith.constant dense<0.000000e+00> : vector<32x256xf32>
    %17 = tpu.matmul %1, %13, %cst_20 {dimension_numbers = #tpu.dot_dimension_numbers<[1], [0], [0], [1], [0, 0, 1, 1], [], []>} : vector<32x32xf32>, vector<32x256xf32>, vector<32x256xf32> -> vector<32x256xf32>
    %18 = arith.addf %16, %17 : vector<32x256xf32>
    %cst_21 = arith.constant dense<0.000000e+00> : vector<32x256xf32>
    %19 = tpu.matmul %2, %15, %cst_21 {dimension_numbers = #tpu.dot_dimension_numbers<[1], [0], [0], [1], [0, 0, 1, 1], [], []>} : vector<32x32xf32>, vector<32x256xf32>, vector<32x256xf32> -> vector<32x256xf32>
    %20 = arith.addf %18, %19 : vector<32x256xf32>
    %21 = vector.broadcast %6 : vector<32x1xf32> to vector<32x256xf32>
    %22 = arith.addf %20, %21 : vector<32x256xf32>
    %cst_22 = arith.constant dense<0.000000e+00> : vector<32xf32>
    %23 = vector.multi_reduction <add>, %22, %cst_22 [1] : vector<32x256xf32> to vector<32xf32>
    %24 = vector.shape_cast %23 : vector<32xf32> to vector<32x1xf32>
    %cst_23 = arith.constant dense<0.000000e+00> : vector<32x1xf32>
    %25 = tpu.matmul %4, %24, %cst_23 {dimension_numbers = #tpu.dot_dimension_numbers<[1], [0], [0], [1], [0, 0, 1, 1], [], []>} : vector<32x32xf32>, vector<32x1xf32>, vector<32x1xf32> -> vector<32x1xf32>
    %cst_24 = arith.constant 9.765625E-4 : f32
    %26 = vector.broadcast %cst_24 : f32 to vector<32x1xf32>
    %27 = arith.mulf %25, %26 : vector<32x1xf32>
    %28 = vector.broadcast %27 : vector<32x1xf32> to vector<32x256xf32>
    %29 = arith.subf %22, %28 : vector<32x256xf32>
    %30 = arith.mulf %29, %29 : vector<32x256xf32>
    %cst_25 = arith.constant dense<0.000000e+00> : vector<32xf32>
    %31 = vector.multi_reduction <add>, %30, %cst_25 [1] : vector<32x256xf32> to vector<32xf32>
    %32 = vector.shape_cast %31 : vector<32xf32> to vector<32x1xf32>
    %cst_26 = arith.constant dense<0.000000e+00> : vector<32x1xf32>
    %33 = tpu.matmul %4, %32, %cst_26 {dimension_numbers = #tpu.dot_dimension_numbers<[1], [0], [0], [1], [0, 0, 1, 1], [], []>} : vector<32x32xf32>, vector<32x1xf32>, vector<32x1xf32> -> vector<32x1xf32>
    %cst_27 = arith.constant 9.765625E-4 : f32
    %34 = vector.broadcast %cst_27 : f32 to vector<32x1xf32>
    %35 = arith.mulf %33, %34 : vector<32x1xf32>
    %cst_28 = arith.constant 9.99999974E-6 : f32
    %36 = vector.broadcast %cst_28 : f32 to vector<32x1xf32>
    %37 = arith.addf %35, %36 : vector<32x1xf32>
    %38 = math.rsqrt %37 : vector<32x1xf32>
    %39 = arith.mulf %38, %7 : vector<32x1xf32>
    %40 = vector.broadcast %39 : vector<32x1xf32> to vector<32x256xf32>
    %41 = arith.mulf %29, %40 : vector<32x256xf32>
    %42 = vector.broadcast %8 : vector<32x1xf32> to vector<32x256xf32>
    %43 = arith.addf %41, %42 : vector<32x256xf32>
    %cst_29 = arith.constant 0.000000e+00 : f32
    %44 = vector.broadcast %cst_29 : f32 to vector<32x256xf32>
    %45 = arith.maximumf %43, %44 : vector<32x256xf32>
    %cst_30 = arith.constant dense<0.000000e+00> : vector<32x256xf32>
    %46 = tpu.matmul %3, %45, %cst_30 {dimension_numbers = #tpu.dot_dimension_numbers<[1], [0], [0], [1], [0, 0, 1, 1], [], []>} : vector<32x32xf32>, vector<32x256xf32>, vector<32x256xf32> -> vector<32x256xf32>
    %47 = vector.broadcast %9 : vector<32x1xf32> to vector<32x256xf32>
    %48 = arith.addf %46, %47 : vector<32x256xf32>
    %c0_31 = arith.constant 0 : index
    %c0_32 = arith.constant 0 : index
    %c0_33 = arith.constant 0 : index
    %49 = vector.load %arg10[%c0_31, %c0_32, %c0_33] : memref<1x32x256xf32, #tpu.memory_space<vmem>>, vector<1x32x256xf32>
    %50 = vector.shape_cast %49 : vector<1x32x256xf32> to vector<32x256xf32>
    %51 = vector.shape_cast %48 : vector<32x256xf32> to vector<1x32x256xf32>
    tpu.vector_store %arg10[%c0_31, %c0_32, %c0_33], %51 {strides = array<i32>} : memref<1x32x256xf32, #tpu.memory_space<vmem>>, vector<1x32x256xf32>,
    return
  }
  func.func @transform_0(%arg0: i32) -> (i32, i32, i32) {
    %c0_i32 = arith.constant 0 : i32
    %c0_i32_0 = arith.constant 0 : i32
    %c0_i32_1 = arith.constant 0 : i32
    return %arg0, %c0_i32, %c0_i32_0 : i32, i32, i32
  }
  func.func @transform_1(%arg0: i32) -> (i32, i32, i32) {
    %c0_i32 = arith.constant 0 : i32
    %c0_i32_0 = arith.constant 0 : i32
    %c0_i32_1 = arith.constant 0 : i32
    return %arg0, %c0_i32, %c0_i32_0 : i32, i32, i32
  }
  func.func @transform_2(%arg0: i32) -> (i32, i32, i32) {
    %c0_i32 = arith.constant 0 : i32
    %c0_i32_0 = arith.constant 0 : i32
    %c0_i32_1 = arith.constant 0 : i32
    return %arg0, %c0_i32, %c0_i32_0 : i32, i32, i32
  }
  func.func @transform_3(%arg0: i32) -> (i32, i32) {
    %c0_i32 = arith.constant 0 : i32
    %c0_i32_0 = arith.constant 0 : i32
    %c0_i32_1 = arith.constant 0 : i32
    return %c0_i32, %c0_i32_0 : i32, i32
  }
  func.func @transform_4(%arg0: i32) -> (i32, i32) {
    %c0_i32 = arith.constant 0 : i32
    %c0_i32_0 = arith.constant 0 : i32
    %c0_i32_1 = arith.constant 0 : i32
    return %c0_i32, %c0_i32_0 : i32, i32
  }
  func.func @transform_5(%arg0: i32) -> (i32, i32) {
    %c0_i32 = arith.constant 0 : i32
    %c0_i32_0 = arith.constant 0 : i32
    %c0_i32_1 = arith.constant 0 : i32
    return %c0_i32, %c0_i32_0 : i32, i32
  }
  func.func @transform_6(%arg0: i32) -> (i32, i32) {
    %c0_i32 = arith.constant 0 : i32
    %c0_i32_0 = arith.constant 0 : i32
    %c0_i32_1 = arith.constant 0 : i32
    return %c0_i32, %c0_i32_0 : i32, i32
  }
  func.func @transform_7(%arg0: i32) -> (i32, i32) {
    %c0_i32 = arith.constant 0 : i32
    %c0_i32_0 = arith.constant 0 : i32
    %c0_i32_1 = arith.constant 0 : i32
    return %c0_i32, %c0_i32_0 : i32, i32
  }
  func.func @transform_8(%arg0: i32) -> (i32, i32) {
    %c0_i32 = arith.constant 0 : i32
    %c0_i32_0 = arith.constant 0 : i32
    %c0_i32_1 = arith.constant 0 : i32
    return %c0_i32, %c0_i32_0 : i32, i32
  }
  func.func @transform_9(%arg0: i32) -> (i32, i32, i32) {
    %c0_i32 = arith.constant 0 : i32
    %c0_i32_0 = arith.constant 0 : i32
    %c0_i32_1 = arith.constant 0 : i32
    return %arg0, %c0_i32, %c0_i32_0 : i32, i32, i32
  }
}

</mosaic_0001>

<bundles_post_ra>
// kernel: tpu_custom_call.1
= control target key start
LH: loop header
LB: loop body
LE: loop exit
PB: predicated region body
PF: predicated region fallthrough
CT: control target
= control target key end

     0   :  { %s2292_s0 = inlined_call_operand.hbm [shape: f32[2,32,256], index: 0, kind: input, shape index: {}]   ;;  %s2293_s1 = inlined_call_operand.hbm [shape: f32[2,32,256], index: 1, kind: input, shape index: {}]   ;;  %s2294_s2 = inlined_call_operand.hbm [shape: f32[2,32,256], index: 2, kind: input, shape index: {}]   ;;  %s2295_s3 = inlined_call_operand.vmem [shape: f32[32,32], index: 3, kind: input, shape index: {}]   ;;  %s2296_s4 = inlined_call_operand.hbm [shape: f32[32,32], index: 4, kind: input, shape index: {}]   ;;  %s2297_s5 = inlined_call_operand.hbm [shape: f32[32,32], index: 5, kind: input, shape index: {}]   ;;  %s2298_s6 = inlined_call_operand.hbm [shape: f32[32,32], index: 6, kind: input, shape index: {}]   ;;  %s2299_s7 = inlined_call_operand.vmem [shape: f32[32,4], index: 7, kind: input, shape index: {}]   ;;  %s2300_s8 = inlined_call_operand.hbm [shape: f32[32,32], index: 8, kind: input, shape index: {}]   ;;  %s2301_s9 = inlined_call_operand.hbm [shape: f32[2,32,256], index: 9, kind: output, shape index: {}]  }
   0x1   :  { %2319 = sst [smem:[#allocation26_spill]] %s2293_s1 }
   0x2   :  { %2320 = sst [smem:[#allocation27_spill]] %s2296_s4 }
   0x3   :  { %2321 = sst [smem:[#allocation28_spill]] %s2298_s6 }
   0x4   :  { %14 = vsyncpa [#allocation3], 0 }
   0x5   :  { %16 = vsyncpa [#allocation3 + $0x1], 0 }
   0x6   :  { %17 = vsyncpa [#allocation6], 0 }
   0x7   :  { %19 = vsyncpa [#allocation6 + $0x1], 0 }
   0x8   :  { %20 = vsyncpa [#allocation9], 0 }
   0x9   :  { %21 = vsyncpa [#allocation12], 0 }
   0xa   :  { %22 = vsyncpa [#allocation4], 0 }
   0xb   :  { %24 = vsyncpa [#allocation4 + $0x1], 0  ;;  %s1879_s30 = smov 0   ;;  %s1881_s10 = smov 0  }
   0xc   :  { %s1883_s11 = smov 0   ;;  %s1885_s12 = smov 0  }
   0xd LB: > { %2322 = sst [smem:[#allocation20_spill]] %s1801_s30  ;;  %s1900_s13 = sadd.s32 4294967295, %s1813_s12   ;;  %s1813_s12 = sphi %s1885_s12, %s2351_s12   ;;  %s1809_s11 = sphi %s1883_s11, %s2355_s11   ;;  %s1805_s10 = sphi %s1881_s10, %s2354_s10   ;;  %s1801_s30 = sphi %s1879_s30, %s2353_s30  }
   0xe   : > { %2323 = sst [smem:[#allocation21_spill]] %s1813_s12  ;;  %s1317_s14 = sadd.s32 4294967294, %s1813_s12  }
   0xf   : > { %p50_p0 = scmp.ne.s32.totalorder %s1805_s10, %s1801_s30  ;;  %p2310_p1 = scmp.eq.s32.totalorder %s1900_s13, 0 }
  0x10   : > { %p252_p2 = scmp.eq.s32.totalorder %s1900_s13, 1  ;;  %p258_p3 = scmp.eq.s32.totalorder %s1317_s14, 1 }
  0x11   : > { %p1909_p4 = por %p2310_p1, %p50_p0  ;;  %p1318_p5 = scmp.ge.s32.totalorder %s1813_s12, 1 }
  0x12   : > { %p1914_p6 = por %p258_p3, %p50_p0  ;;  %p265_p7 = scmp.lt.s32.totalorder %s1813_s12, 3 }
  0x13   : > { %s2327_s4 = sld [smem:[#allocation27_spill]]  ;;  %s1815_s21 = smov [#allocation8]  }
  0x14   : > { %s2325_s16 = scalar_select %p1914_p6, 1, 0 }
  0x15   : > { %p1922_p8 = pnand %p1318_p5, %p265_p7  ;;  %s281_s22 = sshll.u32 %s1815_s21, 4  ;;  %s282_s22 = int_to_ptr.vmem [resolvable:$true] %s281_s22 }
  0x16   : > { %2326 = sst [smem:[#allocation22_spill]] %s2325_s16  ;;  %s2302_s27 = smov 128  }
  0x17   : > { %p1423_p9 = pneg %p1922_p8  ;;  %s2330_s6 = sld [smem:[#allocation28_spill]] }
  0x18   : > { %s2304_s28 = smov 8   ;;  %s1818_s29 = smov [#allocation11]  }
  0x19   : > { %s279_s19 = sshll.u32 %s2327_s4, 4  ;;  %p1930_p10 = pnand %p1423_p9, %p2310_p1  ;;  %s280_s19 = int_to_ptr.hbm [resolvable:$true] %s279_s19 }
  0x1a   : > { %s309_s14 = sshll.u32 %s1818_s29, 4  ;;  %s1949_s17 = sadd.s32 1, %s1813_s12   ;;  %s310_s14 = int_to_ptr.vmem [resolvable:$true] %s309_s14 }
  0x1b   : > { %1426 = dma.hbm_to_vmem [thread:$0]  (!%p1930_p10), %s280_s19, 512, %s282_s22, [#allocation9], %s2302_s27, %s2302_s27, %s2304_s28  }
  0x1c   : > { %2331 = sst [smem:[#allocation23_spill]] %s1949_s17  ;;  %s37_s18 = sadd.s32 1, %s1809_s11 }
  0x1d   : > { %s307_s26 = sshll.u32 %s2330_s6, 4  ;;  %s34_s21 = ssub.s32 %s1813_s12, %s1949_s17  ;;  %s308_s26 = int_to_ptr.hbm [resolvable:$true] %s307_s26 }
  0x1e   : > { %1432 = dma.hbm_to_vmem [thread:$0]  (!%p1930_p10), %s308_s26, 512, %s310_s14, [#allocation12], %s2302_s27, %s2302_s27, %s2304_s28  }
  0x1f   : > { %p44_p12 = scmp.ne.s32.totalorder %s1809_s11, %s1805_s10  ;;  %p35_p13 = scmp.eq.s32.totalorder %s34_s21, 0 }
  0x20   : > { %p45_p0 = scmp.eq.s32.totalorder %s1813_s12, 0  ;;  %p1454_p5 = scmp.lt.s32.totalorder %s1813_s12, 2 }
  0x21   : > { %p1959_p3 = por %p252_p2, %p44_p12  ;;  %s2306_s24 = sand.u32 1, %s1809_s11  }
  0x22   : > { %s1965_s22 = scalar_select %p35_p13, %s1809_s11, %s37_s18  }
  0x23   : > { %s2332_s19 = scalar_select %p1959_p3, 1, 0 }
  0x24   : > { %2334 = sst [smem:[#allocation25_spill]] %s1965_s22  ;;  %p46_p7 = por %p45_p0, %p44_p12 }
  0x25   : > { %2333 = sst [smem:[#allocation24_spill]] %s2332_s19  ;;  %s1970_s25 = sshll.u32 %s2306_s24, 6 }
  0x26   : > { %s1973_s26 = sshll.u32 %s1813_s12, 6  ;;  %p1975_p9 = pnand %p1454_p5, %p46_p7 }
  0x27   : > { %s362_s14 = sand.u32 1, %s1813_s12   ;;  %s2336_s1 = sld [smem:[#allocation26_spill]] }
  0x28   : > { %s366_s4 = scalar_lea.vmem [#allocation5], %s1970_s25  ;;  %s1985_s24 = scalar_lea.sflag [#allocation6], %s362_s14 }
  0x29   : > { %s374_s6 = sshll.u32 %s366_s4, 4  ;;  %p1589_p12 = pneg %p1975_p9  ;;  %s375_s6 = int_to_ptr.vmem [resolvable:$true] %s374_s6 }
  0x2d   : > { %s371_s18 = scalar_lea.hbm %s2336_s1, %s1973_s26  ;;  %s1592_s21 = scalar_lea.hbm %s2336_s1, 128 }
  0x2e   : > { %s372_s28 = sshll.u32 %s371_s18, 4  ;;  %s373_s28 = int_to_ptr.hbm [resolvable:$true] %s372_s28 }
  0x2f   : > { %s1585_s22 = sshra.s32 %s373_s28, 4  ;;  %s1586_s22 = int_to_ptr.hbm [resolvable:$true] %s1585_s22 }
  0x30   : > { %s1587_s17 = scalar_lea.hbm %s1586_s22, 64  ;;  %p1593_p5 = scmp.lt.s32.totalorder %s1586_s22, %s2336_s1 }
  0x31   : > { %p1588_p2 = scmp.ne.s32.totalorder %s1586_s22, %s1587_s17  ;;  %p1594_p7 = scmp.lt.s32.totalorder %s1592_s21, %s1587_s17 }
  0x33   : > { %p1590_p13 = pnand %p1589_p12, %p1588_p2  ;;  %p1595_p11 = por %p1594_p7, %p1593_p5 }
  0x35   : > { %p1591_p0 = pneg %p1590_p13 }
  0x37   : > { %p1596_p1 = pnand %p1595_p11, %p1591_p0 }
  0x39   : > { %1599 = shalt.err (!%p1596_p1)
}
  0x3a   : > { %s2315_s14 = smov 256   ;;  %s2317_s16 = smov 16  }
  0x3b   : > { %1442 = dma.hbm_to_vmem [thread:$0]  (!%p1975_p9), %s373_s28, 1024, %s375_s6, %s1985_s24, %s2315_s14, %s2315_s14, %s2317_s16  }
  0x3c   : > { %s293_s17 = sshll.u32 %s2297_s5, 4  ;;  %s1821_s22 = smov [#allocation10]   ;;  %s294_s17 = int_to_ptr.hbm [resolvable:$true] %s293_s17 }
  0x3d   : > { %s295_s21 = sshll.u32 %s1821_s22, 4  ;;  %s324_s1 = sshll.u32 %s2300_s8, 4  ;;  %s296_s21 = int_to_ptr.vmem [resolvable:$true] %s295_s21  ;;  %s325_s1 = int_to_ptr.hbm [resolvable:$true] %s324_s1 }
  0x3e   : > { %s2337_s30 = smov 8   ;;  %s2338_s19 = smov 128  }
  0x3f   : > { %1429 = dma.hbm_to_vmem [thread:$0]  (!%p1930_p10), %s294_s17, 512, %s296_s21, [#allocation9], %s2338_s19, %s2338_s19, %s2337_s30  }
  0x40   : > { %s1822_s6 = smov [#allocation13]   ;;  %s349_s22 = scalar_lea.hbm %s2292_s0, %s1973_s26 }
  0x41   : > { %s326_s28 = sshll.u32 %s1822_s6, 4  ;;  %s344_s18 = scalar_lea.vmem [#allocation2], %s1970_s25  ;;  %s327_s28 = int_to_ptr.vmem [resolvable:$true] %s326_s28 }
  0x42   : > { %1435 = dma.hbm_to_vmem [thread:$0]  (!%p1930_p10), %s325_s1, 512, %s327_s28, [#allocation12], %s2338_s19, %s2338_s19, %s2337_s30  }
  0x43   : > { %s352_s4 = sshll.u32 %s344_s18, 4  ;;  %s350_s14 = sshll.u32 %s349_s22, 4  ;;  %s353_s4 = int_to_ptr.vmem [resolvable:$true] %s352_s4  ;;  %s351_s14 = int_to_ptr.hbm [resolvable:$true] %s350_s14 }
  0x44   : > { %s2339_s17 = sand.u32 1, %s1809_s11   ;;  %s1675_s16 = sshra.s32 %s351_s14, 4  ;;  %s1676_s16 = int_to_ptr.hbm [resolvable:$true] %s1675_s16 }
  0x45   : > { %s341_s21 = scalar_lea.sflag [#allocation3], %s2339_s17  ;;  %s1677_s6 = scalar_lea.hbm %s1676_s16, 64 }
  0x46   : > { %p1678_p1 = scmp.ne.s32.totalorder %s1676_s16, %s1677_s6  ;;  %s1682_s23 = scalar_lea.hbm %s2292_s0, 128 }
  0x47   : > { %p1683_p10 = scmp.lt.s32.totalorder %s1676_s16, %s2292_s0  ;;  %p1684_p13 = scmp.lt.s32.totalorder %s1682_s23, %s1677_s6 }
  0x48   : > { %p1680_p11 = pnand %p1678_p1, %p1589_p12 }
  0x49   : > { %p1685_p0 = por %p1684_p13, %p1683_p10 }
  0x4a   : > { %p1681_p2 = pneg %p1680_p11 }
  0x4c   : > { %p1686_p5 = pnand %p1685_p0, %p1681_p2 }
  0x4e   : > { %1689 = shalt.err (!%p1686_p5)
}
  0x4f   : > { %s2340_s12 = smov 16   ;;  %s2341_s27 = smov 256  }
  0x50   : > { %1439 = dma.hbm_to_vmem [thread:$0]  (!%p1975_p9), %s351_s14, 1024, %s353_s4, %s341_s21, %s2341_s27, %s2341_s27, %s2340_s12  }
  0x51   : > { %s393_s17 = scalar_lea.hbm %s2294_s2, %s1973_s26  ;;  %s388_s1 = scalar_lea.vmem [#allocation7], %s1970_s25 }
  0x52   : > { %s396_s30 = sshll.u32 %s388_s1, 4  ;;  %s394_s16 = sshll.u32 %s393_s17, 4  ;;  %s397_s30 = int_to_ptr.vmem [resolvable:$true] %s396_s30  ;;  %s395_s16 = int_to_ptr.hbm [resolvable:$true] %s394_s16 }
  0x53   : > { %s1705_s6 = sshra.s32 %s395_s16, 4  ;;  %s1712_s14 = scalar_lea.hbm %s2294_s2, 128  ;;  %s1706_s6 = int_to_ptr.hbm [resolvable:$true] %s1705_s6 }
  0x54   : > { %s1707_s23 = scalar_lea.hbm %s1706_s6, 64  ;;  %p1713_p2 = scmp.lt.s32.totalorder %s1706_s6, %s2294_s2 }
  0x55   : > { %p1708_p7 = scmp.ne.s32.totalorder %s1706_s6, %s1707_s23  ;;  %p1714_p10 = scmp.lt.s32.totalorder %s1712_s14, %s1707_s23 }
  0x57   : > { %p1710_p1 = pnand %p1708_p7, %p1589_p12  ;;  %p1715_p13 = por %p1714_p10, %p1713_p2 }
  0x59   : > { %p1711_p11 = pneg %p1710_p1 }
  0x5b   : > { %p1716_p0 = pnand %p1715_p13, %p1711_p11 }
  0x5d   : > { %1719 = shalt.err (!%p1716_p0)
}
  0x5e   : > { %1445 = dma.hbm_to_vmem [thread:$0]  (!%p1975_p9), %s395_s16, 1024, %s397_s30, %s1985_s24, %s2341_s27, %s2341_s27, %s2340_s12  }
  0x5f   : > { %408 = sbr.rel (%p1922_p8) target bundleno = 1275 (0x4fb), region = 56  ;;  %s2064_s25 = sand.u32 (!%p1922_p8), 1, %s1805_s10  }
  0x60   : > { %s2067_s26 = sshll.u32 (!%p1922_p8), %s2064_s25, 6  ;;  %s411_s22 = scalar_lea.sflag (!%p1922_p8), [#allocation3], %s2064_s25 }
  0x61   : > { %s2071_s18 = scalar_lea.vmem (!%p1922_p8), [#allocation2], %s2067_s26 }
  0x64   : > { %1780 = dma.done.wait (%p1909_p4), %s411_s22, 1024  }
  0x65   : > { %1782 = vsyncadd (%p1909_p4), %s411_s22, 4294966272  ;;  %s420_s20 = sand.u32 1, %s1900_s13   ;;  %s424_s29 = scalar_lea.vmem [#allocation5], %s2067_s26 }
  0x66   : > { %s421_s24 = scalar_lea.sflag [#allocation6], %s420_s20 }
  0x67   : > { %1784 = dma.done.wait (%p1909_p4), %s421_s24, 2048  }
  0x68   : > { %1786 = vsyncadd (%p1909_p4), %s421_s24, 4294965248  ;;  %s2084_s12 = scalar_lea.vmem [#allocation7], %s2067_s26  ;;  %p2342_p8 = scmp.eq.s32.totalorder %s1900_s13, 0 }
  0x6a   : > { %1788 = dma.done.wait (%p2342_p8), [#allocation9], 1024   ;;  %p2343_p9 = pmov %p2342_p8 }
  0x6b   : > { %p2344_p12 = pmov %p2342_p8 }
  0x6c   : > { %1790 = vsyncadd (%p2343_p9), [#allocation9], 4294966272 }
  0x6d   : > { %1792 = dma.done.wait (%p2344_p12), [#allocation12], 1024   ;;  %p2345_p5 = pmov %p2342_p8 }
  0x6e   : > { %v538_v0 = vld [vmem:[%s424_s29 + $0x30] sm:$0xff]  ;;  %v539_v1 = vld [vmem:[%s424_s29 + $0x38] sm:$0xff]  ;;  %v536_v2 = vld [vmem:[%s424_s29 + $0x20] sm:$0xff]  ;;  %vm548_vm0 = vcmask 261120   ;;  %v1823_v30 = vmov 0   ;;  %s1824_s24 = smov 127  }
  0x6f   : > { %1794 = vsyncadd (%p2345_p5), [#allocation12], 4294966272  ;;  %1391 = vmatpush.msra.mxu2 %v538_v0  ;;  %1395 = vmatpush.msra.mxu3 %v539_v1  ;;  %v537_v3 = vld [vmem:[%s424_s29 + $0x28] sm:$0xff]  ;;  %v534_v4 = vld [vmem:[%s424_s29 + $0x10] sm:$0xff]  ;;  %s1755_s28 = scalar_lea.hbm %s2301_s9, 128 }
  0x70   : > { %v535_v5 = vld [vmem:[%s424_s29 + $0x18] sm:$0xff]  ;;  %573 = vmatpush.msra.mxu0 %v538_v0  ;;  %602 = vmatpush.msra.mxu1 %v539_v1  ;;  %v532_v6 = vld [vmem:[%s424_s29] sm:$0xff]  ;;  %v533_v7 = vld [vmem:[%s424_s29 + $0x8] sm:$0xff]  ;;  %s499_s29 = scalar_lea.vmem [#allocation14], %s2067_s26 }
  0x71   : > { %1392 = vmatpush.msra.mxu2 %v536_v2  ;;  %1396 = vmatpush.msra.mxu3 %v537_v3  ;;  %v506_v8 = vld [vmem:[#allocation8 + $0x10] sm:$0xff]  ;;  %v504_v9 = vld [vmem:[#allocation8] sm:$0xff]  ;;  %v531_v11 = vld [vmem:[%s2071_s18 + $0x38] sm:$0xff]  ;;  %s1160_s17 = sshll.u32 %s499_s29, 4  ;;  %s1161_s17 = int_to_ptr.vmem [resolvable:$true] %s1160_s17 }
  0x72   : > { %574 = vmatpush.msra.mxu0 %v536_v2  ;;  %603 = vmatpush.msra.mxu1 %v537_v3  ;;  %v530_v10 = vld [vmem:[%s2071_s18 + $0x30] sm:$0xff]  ;;  %v547_v13 = vld [vmem:[%s2084_s12 + $0x38] sm:$0xff]  ;;  %v528_v14 = vld [vmem:[%s2071_s18 + $0x20] sm:$0xff] }
  0x73   : > { %1393 = vmatpush.msra.mxu2 %v534_v4  ;;  %1397 = vmatpush.msra.mxu3 %v535_v5  ;;  %v546_v12 = vld [vmem:[%s2084_s12 + $0x30] sm:$0xff]  ;;  %v529_v15 = vld [vmem:[%s2071_s18 + $0x28] sm:$0xff]  ;;  %v544_v16 = vld [vmem:[%s2084_s12 + $0x20] sm:$0xff] }
  0x74   : > { %575 = vmatpush.msra.mxu0 %v534_v4  ;;  %604 = vmatpush.msra.mxu1 %v535_v5  ;;  %v545_v17 = vld [vmem:[%s2084_s12 + $0x28] sm:$0xff]  ;;  %v526_v18 = vld [vmem:[%s2071_s18 + $0x10] sm:$0xff]  ;;  %v527_v19 = vld [vmem:[%s2071_s18 + $0x18] sm:$0xff] }
  0x75   : > { %1394 = vmatpush.msra.mxu2 %v532_v6  ;;  %1398 = vmatpush.msra.mxu3 %v533_v7  ;;  %v507_v20 = vld [vmem:[#allocation8 + $0x18] sm:$0xff]  ;;  %v524_v21 = vld [vmem:[%s2071_s18] sm:$0xff]  ;;  %v525_v22 = vld [vmem:[%s2071_s18 + $0x8] sm:$0xff] }
  0x76   : > { %1344 = vmatmul.msk.f32.vlgmr.msra.gmra.mxu2 %vm548_vm0, %v506_v8  ;;  %1348 = vmatmul.msk.f32.vlgmr.msra.gmra.mxu3 %vm548_vm0, %v506_v8  ;;  %v505_v23 = vld [vmem:[#allocation8 + $0x8] sm:$0xff]  ;;  %v542_v24 = vld [vmem:[%s2084_s12 + $0x10] sm:$0xff]  ;;  %v543_v25 = vld [vmem:[%s2084_s12 + $0x18] sm:$0xff] }
  0x77   : > { %576 = vmatpush.msra.mxu0 %v532_v6  ;;  %605 = vmatpush.msra.mxu1 %v533_v7  ;;  %v540_v26 = vld [vmem:[%s2084_s12] sm:$0xff]  ;;  %v541_v27 = vld [vmem:[%s2084_s12 + $0x8] sm:$0xff]  ;;  %v2126_v29 = vld [vmem:[%s2299_s7 + $0x18] sm:$0xff]  ;;  %s1390_s12 = sshll.u32 %s1900_s13, 6  ;;  %s1148_s13 = scalar_lea.sflag [#allocation4], %s2064_s25 }
  0x78   : > { %1342 = vmatmul.msk.f32.vlgmr.msra.gmra.mxu0 %vm548_vm0, %v504_v9  ;;  %1346 = vmatmul.msk.f32.vlgmr.msra.gmra.mxu1 %vm548_vm0, %v504_v9  ;;  %v2121_v28 = vld [vmem:[%s2299_s7 + $0x8] sm:$0xff]  ;;  %v500_v31 = vld [vmem:[%s2295_s3] sm:$0xff]  ;;  %v2148_v34 = vld [vmem:[%s2299_s7 + $0x10] sm:$0xff]  ;;  %s1159_s26 = scalar_lea.hbm %s2301_s9, %s1390_s12 }
  0x79   : > { %643 = vmatpush.msrb.mxu2 %v530_v10  ;;  %672 = vmatpush.msrb.mxu3 %v531_v11  ;;  %v508_v32 = vld [vmem:[#allocation10] sm:$0xff]  ;;  %v501_v35 = vld [vmem:[%s2295_s3 + $0x8] sm:$0xff]  ;;  %v502_v37 = vld [vmem:[%s2295_s3 + $0x10] sm:$0xff]  ;;  %s1162_s30 = sshll.u32 %s1159_s26, 4  ;;  %s1163_s30 = int_to_ptr.hbm [resolvable:$true] %s1162_s30 }
  0x7a   : > { %713 = vmatpush.msrb.mxu0 %v546_v12  ;;  %742 = vmatpush.msrb.mxu1 %v547_v13  ;;  %v2143_v33 = vld [vmem:[%s2299_s7] sm:$0xff]  ;;  %v509_v36 = vld [vmem:[#allocation10 + $0x8] sm:$0xff]  ;;  %v510_v38 = vld [vmem:[#allocation10 + $0x10] sm:$0xff]  ;;  %s1749_s16 = sshra.s32 %s1163_s30, 4  ;;  %s1750_s16 = int_to_ptr.hbm [resolvable:$true] %s1749_s16 }
  0x7b   : > { %644 = vmatpush.msrb.mxu2 %v528_v14  ;;  %673 = vmatpush.msrb.mxu3 %v529_v15  ;;  %v503_v39 = vld [vmem:[%s2295_s3 + $0x18] sm:$0xff]  ;;  %s1751_s6 = scalar_lea.hbm %s1750_s16, 64  ;;  %p1756_p11 = scmp.lt.s32.totalorder %s1750_s16, %s2301_s9 }
  0x7c   : > { %714 = vmatpush.msrb.mxu0 %v544_v16  ;;  %743 = vmatpush.msrb.mxu1 %v545_v17  ;;  %v511_v40 = vld [vmem:[#allocation10 + $0x18] sm:$0xff]  ;;  %p1752_p4 = scmp.ne.s32.totalorder %s1750_s16, %s1751_s6  ;;  %p1757_p2 = scmp.lt.s32.totalorder %s1755_s28, %s1751_s6 }
  0x7d   : > { %645 = vmatpush.msrb.mxu2 %v526_v18  ;;  %674 = vmatpush.msrb.mxu3 %v527_v19 }
  0x7e   : > { %1345 = vmatmul.msk.f32.gmra.mxu2 %vm548_vm0, %v507_v20  ;;  %1349 = vmatmul.msk.f32.gmra.mxu3 %vm548_vm0, %v507_v20  ;;  %p1753_p7 = pnand %p1752_p4, %p1959_p3  ;;  %p1758_p10 = por %p1757_p2, %p1756_p11 }
  0x7f   : > { %646 = vmatpush.msrb.mxu2 %v524_v21  ;;  %675 = vmatpush.msrb.mxu3 %v525_v22 }
  0x80   : > { %1343 = vmatmul.msk.f32.gmra.mxu0 %vm548_vm0, %v505_v23  ;;  %1347 = vmatmul.msk.f32.gmra.mxu1 %vm548_vm0, %v505_v23  ;;  %p1754_p1 = pneg %p1753_p7 }
  0x81   : > { %715 = vmatpush.msrb.mxu0 %v542_v24  ;;  %744 = vmatpush.msrb.mxu1 %v543_v25 }
  0x82   : > { %1507 = vset.pattern.permute.xlu1 %v1823_v30  ;;  %1506 = vset.pattern.permute.xlu0 %v1823_v30  ;;  %p1759_p13 = pnand %p1758_p10, %p1754_p1 }
  0x83   : > { %716 = vmatpush.msrb.mxu0 %v540_v26  ;;  %745 = vmatpush.msrb.mxu1 %v541_v27 }
  0x84   : > { %774 = vperm.xlu1 %1507, %v2121_v28   ;;  %784 = vperm.xlu0 %1506, %v2126_v29  }
  0x85   : > { %1508 = vset.pattern.permute.xlu2 %v1823_v30 }
  0x86   : > { %1350 = vmatmul.msk.f32.vlgmr.msrb.gmra.mxu2 %vm548_vm0, %v500_v31  ;;  %1354 = vmatmul.msk.f32.vlgmr.msrb.gmra.mxu3 %vm548_vm0, %v500_v31 }
  0x88   : > { %1358 = vmatmul.msk.f32.vlgmr.msrb.gmra.mxu0 %vm548_vm0, %v508_v32  ;;  %1362 = vmatmul.msk.f32.vlgmr.msrb.gmra.mxu1 %vm548_vm0, %v508_v32 }
  0x8c   : > { %769 = vperm.xlu1 %1507, %v2143_v33   ;;  %779 = vperm.xlu0 %1506, %v2148_v34  }
  0x8e   : > { %1351 = vmatmul.msk.f32.gmra.mxu2 %vm548_vm0, %v501_v35  ;;  %1355 = vmatmul.msk.f32.gmra.mxu3 %vm548_vm0, %v501_v35 }
  0x90   : > { %1359 = vmatmul.msk.f32.gmra.mxu0 %vm548_vm0, %v509_v36  ;;  %1363 = vmatmul.msk.f32.gmra.mxu1 %vm548_vm0, %v509_v36 }
  0x96   : > { %1352 = vmatmul.msk.f32.gmra.mxu2 %vm548_vm0, %v502_v37  ;;  %1356 = vmatmul.msk.f32.gmra.mxu3 %vm548_vm0, %v502_v37 }
  0x98   : > { %1360 = vmatmul.msk.f32.gmra.mxu0 %vm548_vm0, %v510_v38  ;;  %1364 = vmatmul.msk.f32.gmra.mxu1 %vm548_vm0, %v510_v38 }
  0x9e   : > { %1353 = vmatmul.msk.f32.gmra.mxu2 %vm548_vm0, %v503_v39  ;;  %1357 = vmatmul.msk.f32.gmra.mxu3 %vm548_vm0, %v503_v39 }
  0xa0   : > { %1361 = vmatmul.msk.f32.gmra.mxu0 %vm548_vm0, %v511_v40  ;;  %1365 = vmatmul.msk.f32.gmra.mxu1 %vm548_vm0, %v511_v40 }
  0xf5   : > { %v578_v41 = vpop.f32.mrf.mxu0  ;;  %v607_v42 = vpop.f32.mrf.mxu1 }
  0xf6   : > { %v775_v47 = vpop.permute.xlu1 %774  ;;  %v785_v13 = vpop.permute.xlu0 %784 }
  0xf9   : > { %v584_v43 = vpop.f32.mrf.mxu2  ;;  %v613_v44 = vpop.f32.mrf.mxu3 }
  0xfd   : > { %v581_v45 = vpop.f32.mrf.mxu0  ;;  %v610_v46 = vpop.f32.mrf.mxu1 }
  0xfe   : > { %v770_v56 = vpop.permute.xlu1 %769  ;;  %v780_v32 = vpop.permute.xlu0 %779 }
 0x101   : > { %v587_v48 = vpop.f32.mrf.mxu2  ;;  %v616_v49 = vpop.f32.mrf.mxu3 }
 0x105   : > { %v718_v50 = vpop.f32.mrf.mxu0  ;;  %v747_v51 = vpop.f32.mrf.mxu1 }
 0x109   : > { %v648_v52 = vpop.f32.mrf.mxu2  ;;  %v677_v53 = vpop.f32.mrf.mxu3 }
 0x10a   : > { %v649_v54 = vadd.f32 %v648_v52, %v578_v41  ;;  %v678_v55 = vadd.f32 %v677_v53, %v607_v42  ;;  %v2179_v41 = vld [vmem:[#allocation13] sm:$0xff] }
 0x10c   : > { %v759_v57 = vadd.f32 %v718_v50, %v649_v54  ;;  %v760_v58 = vadd.f32 %v747_v51, %v678_v55 }
 0x10d   : > { %v721_v59 = vpop.f32.mrf.mxu0  ;;  %v750_v60 = vpop.f32.mrf.mxu1 }
 0x10e   : > { %v2173_v61 = vadd.f32 %v770_v56, %v759_v57  ;;  %v2175_v62 = vadd.f32 %v770_v56, %v760_v58 }
 0x110   : > { %v795_v63 = vadd.f32 %v2175_v62, %v2173_v61 }
 0x111   : > { %v651_v0 = vpop.f32.mrf.mxu2  ;;  %v680_v1 = vpop.f32.mrf.mxu3 }
 0x112   : > { %v652_v2 = vadd.f32 %v651_v0, %v581_v45  ;;  %v681_v3 = vadd.f32 %v680_v1, %v610_v46  ;;  %796 = vadd.xlane.f32.xlu1 %v795_v63  ;;  %v519_v45 = vld [vmem:[#allocation13 + $0x18] sm:$0xff] }
 0x114   : > { %v761_v4 = vadd.f32 %v721_v59, %v652_v2  ;;  %v762_v5 = vadd.f32 %v750_v60, %v681_v3 }
 0x115   : > { %v724_v8 = vpop.f32.mrf.mxu0  ;;  %v753_v9 = vpop.f32.mrf.mxu1 }
 0x116   : > { %v789_v6 = vadd.f32 %v775_v47, %v761_v4  ;;  %v790_v7 = vadd.f32 %v775_v47, %v762_v5 }
 0x118   : > { %v798_v10 = vadd.f32 %v790_v7, %v789_v6 }
 0x119   : > { %v654_v11 = vpop.f32.mrf.mxu2  ;;  %v683_v12 = vpop.f32.mrf.mxu3 }
 0x11a   : > { %799 = vadd.xlane.f32.xlu0 %v798_v10  ;;  %v655_v20 = vadd.f32 %v654_v11, %v584_v43  ;;  %v684_v21 = vadd.f32 %v683_v12, %v613_v44  ;;  %v517_v43 = vld [vmem:[#allocation13 + $0x8] sm:$0xff]  ;;  %v518_v44 = vld [vmem:[#allocation13 + $0x10] sm:$0xff] }
 0x11c   : > { %v763_v26 = vadd.f32 %v724_v8, %v655_v20  ;;  %v764_v27 = vadd.f32 %v753_v9, %v684_v21 }
 0x11d   : > { %v727_v14 = vpop.f32.mrf.mxu0  ;;  %v756_v15 = vpop.f32.mrf.mxu1 }
 0x11e   : > { %v791_v35 = vadd.f32 %v780_v32, %v763_v26  ;;  %v792_v36 = vadd.f32 %v780_v32, %v764_v27 }
 0x120   : > { %v801_v37 = vadd.f32 %v792_v36, %v791_v35 }
 0x121   : > { %v657_v16 = vpop.f32.mrf.mxu2  ;;  %v686_v17 = vpop.f32.mrf.mxu3 }
 0x122   : > { %v658_v18 = vadd.f32 %v657_v16, %v587_v48  ;;  %v687_v19 = vadd.f32 %v686_v17, %v616_v49 }
 0x124   : > { %v765_v22 = vadd.f32 %v727_v14, %v658_v18  ;;  %v766_v23 = vadd.f32 %v756_v15, %v687_v19  ;;  %v1825_v18 = vmov 2  }
 0x125   : > { %1510 = vset.pattern.permute.xlu0 %v1825_v18 }
 0x126   : > { %v793_v24 = vadd.f32 %v785_v13, %v765_v22  ;;  %v794_v25 = vadd.f32 %v785_v13, %v766_v23 }
 0x128   : > { %v804_v31 = vadd.f32 %v794_v25, %v793_v24 }
 0x12a   : > { %805 = vadd.xlane.f32.xlu2 %v804_v31 }
 0x132   : > { %802 = vadd.xlane.f32.xlu2 %v801_v37 }
 0x185   : > { %v797_v42 = vpop.xlane.xlu1 %796 }
 0x18d   : > { %v800_v40 = vpop.xlane.xlu0 %799 }
 0x19d   : > { %v806_v38 = vpop.xlane.xlu2 %805 }
 0x19e   : > { %831 = vmatpush.msra.mxu2 %v806_v38 }
 0x1a5   : > { %v803_v39 = vpop.xlane.xlu2 %802 }
 0x1a6   : > { %832 = vmatpush.msra.mxu2 %v803_v39 }
 0x1a8   : > { %833 = vmatpush.msra.mxu2 %v800_v40 }
 0x1aa   : > { %834 = vmatpush.msra.mxu2 %v797_v42 }
 0x1ab   : > { %1366 = vmatmul.msk.f32.vlgmr.msra.gmra.mxu2 %vm548_vm0, %v2179_v41 }
 0x1b3   : > { %1367 = vmatmul.msk.f32.gmra.mxu2 %vm548_vm0, %v517_v43 }
 0x1bb   : > { %1368 = vmatmul.msk.f32.gmra.mxu2 %vm548_vm0, %v518_v44 }
 0x1c3   : > { %1369 = vmatmul.msk.f32.gmra.mxu2 %vm548_vm0, %v519_v45 }
 0x22e   : > { %v836_v46 = vpop.f32.mrf.mxu2 }
 0x22f   : > { %v848_v53 = vmul.f32 0.0009765625, %v836_v46 }
 0x236   : > { %v839_v47 = vpop.f32.mrf.mxu2 }
 0x237   : > { %v849_v48 = vmul.f32 0.0009765625, %v839_v47 }
 0x239   : > { %859 = vperm.xlu2 %1508, %v849_v48  }
 0x23e   : > { %v842_v49 = vpop.f32.mrf.mxu2 }
 0x23f   : > { %v850_v50 = vmul.f32 0.0009765625, %v842_v49 }
 0x241   : > { %864 = vperm.xlu2 %1508, %v850_v50  }
 0x246   : > { %v845_v51 = vpop.f32.mrf.mxu2 }
 0x247   : > { %v851_v52 = vmul.f32 0.0009765625, %v845_v51 }
 0x249   : > { %869 = vperm.xlu2 %1508, %v851_v52  }
 0x251   : > { %854 = vperm.xlu2 %1508, %v848_v53  }
 0x259   : > { %1509 = vset.pattern.permute.xlu2 %v1825_v18 }
 0x293   : > { %v860_v54 = vpop.permute.xlu2 %859 }
 0x294   : > { %v2186_v55 = vsub.f32 %v789_v6, %v860_v54  ;;  %v2188_v56 = vsub.f32 %v790_v7, %v860_v54 }
 0x296   : > { %v882_v57 = vmul.f32 %v2186_v55, %v2186_v55  ;;  %v883_v58 = vmul.f32 %v2188_v56, %v2188_v56 }
 0x298   : > { %v891_v59 = vadd.f32 %v883_v58, %v882_v57 }
 0x29a   : > { %892 = vadd.xlane.f32.xlu2 %v891_v59 }
 0x29b   : > { %v865_v60 = vpop.permute.xlu2 %864 }
 0x29c   : > { %v2194_v63 = vsub.f32 %v791_v35, %v865_v60  ;;  %v2196_v0 = vsub.f32 %v792_v36, %v865_v60 }
 0x29e   : > { %v884_v1 = vmul.f32 %v2194_v63, %v2194_v63  ;;  %v885_v2 = vmul.f32 %v2196_v0, %v2196_v0 }
 0x2a0   : > { %v894_v3 = vadd.f32 %v885_v2, %v884_v1 }
 0x2a2   : > { %895 = vadd.xlane.f32.xlu1 %v894_v3 }
 0x2a3   : > { %v870_v4 = vpop.permute.xlu2 %869 }
 0x2a4   : > { %v2202_v5 = vsub.f32 %v793_v24, %v870_v4  ;;  %v2204_v6 = vsub.f32 %v794_v25, %v870_v4 }
 0x2a6   : > { %v886_v7 = vmul.f32 %v2202_v5, %v2202_v5  ;;  %v887_v8 = vmul.f32 %v2204_v6, %v2204_v6 }
 0x2a8   : > { %v897_v9 = vadd.f32 %v887_v8, %v886_v7 }
 0x2aa   : > { %898 = vadd.xlane.f32.xlu0 %v897_v9 }
 0x2ab   : > { %v855_v10 = vpop.permute.xlu2 %854 }
 0x2ac   : > { %v2211_v11 = vsub.f32 %v2173_v61, %v855_v10  ;;  %v2214_v12 = vsub.f32 %v2175_v62, %v855_v10 }
 0x2ae   : > { %v880_v13 = vmul.f32 %v2211_v11, %v2211_v11  ;;  %v881_v14 = vmul.f32 %v2214_v12, %v2214_v12 }
 0x2b0   : > { %v888_v15 = vadd.f32 %v881_v14, %v880_v13 }
 0x2b2   : > { %889 = vadd.xlane.f32.xlu0 %v888_v15  ;;  %1034 = vperm.xlu2 %1509, %v2126_v29  }
 0x2bb   : > { %983 = vrot.lane.b32.xlu1 %v2126_v29, %s1824_s24 }
 0x2c3   : > { %979 = vrot.lane.b32.xlu1 %v2121_v28, %s1824_s24 }
 0x2c6   : > { %981 = vrot.lane.b32.xlu0 %v2148_v34, %s1824_s24 }
 0x2ce   : > { %977 = vrot.lane.b32.xlu0 %v2143_v33, %s1824_s24 }
 0x2d6   : > { %1030 = vperm.xlu0 %1510, %v2148_v34  }
 0x2de   : > { %1511 = vset.pattern.permute.xlu0 %v1823_v30 }
 0x30d   : > { %v893_v16 = vpop.xlane.xlu2 %892 }
 0x315   : > { %v896_v62 = vpop.xlane.xlu1 %895 }
 0x31d   : > { %v899_v61 = vpop.xlane.xlu0 %898 }
 0x31e   : > { %912 = vmatpush.msra.mxu3 %v899_v61 }
 0x320   : > { %913 = vmatpush.msra.mxu3 %v896_v62 }
 0x322   : > { %914 = vmatpush.msra.mxu3 %v893_v16 }
 0x325   : > { %v890_v17 = vpop.xlane.xlu0 %889 }
 0x326   : > { %915 = vmatpush.msra.mxu3 %v890_v17 }
 0x327   : > { %1370 = vmatmul.msk.f32.vlgmr.msra.gmra.mxu3 %vm548_vm0, %v2179_v41 }
 0x32d   : > { %v984_v37 = vpop.permute.xlu1 %983 }
 0x32f   : > { %1371 = vmatmul.msk.f32.gmra.mxu3 %vm548_vm0, %v517_v43 }
 0x335   : > { %v980_v53 = vpop.permute.xlu1 %979 }
 0x337   : > { %1372 = vmatmul.msk.f32.gmra.mxu3 %vm548_vm0, %v518_v44 }
 0x338   : > { %v982_v24 = vpop.permute.xlu0 %981 }
 0x33f   : > { %1373 = vmatmul.msk.f32.gmra.mxu3 %vm548_vm0, %v519_v45 }
 0x340   : > { %v978_v42 = vpop.permute.xlu0 %977 }
 0x348   : > { %v1031_v16 = vpop.permute.xlu0 %1030 }
 0x3aa   : > { %v917_v19 = vpop.f32.mrf.mxu3 }
 0x3ab   : > { %v929_v20 = vmul.f32 0.0009765625, %v917_v19 }
 0x3ad   : > { %v933_v21 = vadd.f32 1e-05, %v929_v20 }
 0x3af   : > { %1517 = vrsqrt.f32 %v933_v21  ;;  %vm943_vm2 = vweird.f32 %v933_v21 }
 0x3b2   : > { %v920_v22 = vpop.f32.mrf.mxu3 }
 0x3b3   : > { %v930_v23 = vmul.f32 0.0009765625, %v920_v22 }
 0x3b5   : > { %v1518_v25 = vpop.eup %1517  ;;  %v934_v26 = vadd.f32 1e-05, %v930_v23  ;;  %v1035_v23 = vpop.permute.xlu2 %1034 }
 0x3b6   : > { %v938_v27 = vmul.f32 %v1518_v25, %v933_v21  ;;  %vm944_vm1 = vweird.f32 %v1518_v25 }
 0x3b7   : > { %1519 = vrsqrt.f32 %v934_v26  ;;  %vm945_vm3 = vmor %vm943_vm2, %vm944_vm1  ;;  %vm953_vm5 = vweird.f32 %v934_v26 }
 0x3b8   : > { %v939_v31 = vmul.f32 %v1518_v25, %v938_v27 }
 0x3ba   : > { %v940_v32 = vmul.f32 0.5, %v939_v31  ;;  %v923_v35 = vpop.f32.mrf.mxu3 }
 0x3bb   : > { %v931_v36 = vmul.f32 0.0009765625, %v923_v35 }
 0x3bc   : > { %v941_v38 = vsub.f32 1.5, %v940_v32  ;;  %v1826_v32 = vmov 3  }
 0x3bd   : > { %v1520_v39 = vpop.eup %1519  ;;  %v935_v40 = vadd.f32 1e-05, %v931_v36  ;;  %1514 = vset.pattern.permute.xlu2 %v1826_v32 }
 0x3be   : > { %v948_v41 = vmul.f32 %v1520_v39, %v934_v26  ;;  %v942_v43 = vmul.f32 %v1518_v25, %v941_v38  ;;  %vm954_vm4 = vweird.f32 %v1520_v39  ;;  %1054 = vperm.xlu2 %1514, %v2143_v33  }
 0x3bf   : > { %1521 = vrsqrt.f32 %v935_v40  ;;  %vm955_vm6 = vmor %vm953_vm5, %vm954_vm4  ;;  %vm963_vm8 = vweird.f32 %v935_v40 }
 0x3c0   : > { %v949_v30 = vmul.f32 %v1520_v39, %v948_v41  ;;  %v946_v44 = vsel %vm945_vm3, %v1518_v25, %v942_v43 }
 0x3c1   : > { %v989_v45 = vmul.f32 %v978_v42, %v946_v44 }
 0x3c2   : > { %v950_v46 = vmul.f32 0.5, %v949_v30  ;;  %v926_v47 = vpop.f32.mrf.mxu3 }
 0x3c3   : > { %v932_v48 = vmul.f32 0.0009765625, %v926_v47  ;;  %995 = vperm.xlu1 %1507, %v989_v45  }
 0x3c4   : > { %v951_v49 = vsub.f32 1.5, %v950_v46 }
 0x3c5   : > { %v1522_v50 = vpop.eup %1521  ;;  %v936_v51 = vadd.f32 1e-05, %v932_v48 }
 0x3c6   : > { %v958_v52 = vmul.f32 %v1522_v50, %v935_v40  ;;  %v952_v54 = vmul.f32 %v1520_v39, %v951_v49  ;;  %vm964_vm7 = vweird.f32 %v1522_v50  ;;  %1066 = vperm.xlu2 %1514, %v2126_v29  }
 0x3c7   : > { %1523 = vrsqrt.f32 %v936_v51  ;;  %vm965_vm9 = vmor %vm963_vm8, %vm964_vm7  ;;  %vm973_vm11 = vweird.f32 %v936_v51 }
 0x3c8   : > { %v959_v57 = vmul.f32 %v1522_v50, %v958_v52  ;;  %v956_v58 = vsel %vm955_vm6, %v1520_v39, %v952_v54 }
 0x3c9   : > { %v990_v59 = vmul.f32 %v980_v53, %v956_v58 }
 0x3ca   : > { %v960_v60 = vmul.f32 0.5, %v959_v57 }
 0x3cb   : > { %1000 = vperm.xlu1 %1507, %v990_v59  }
 0x3cc   : > { %v961_v1 = vsub.f32 1.5, %v960_v60 }
 0x3cd   : > { %v1524_v2 = vpop.eup %1523 }
 0x3ce   : > { %v968_v3 = vmul.f32 %v1524_v2, %v936_v51  ;;  %v962_v4 = vmul.f32 %v1522_v50, %v961_v1  ;;  %vm974_vm10 = vweird.f32 %v1524_v2 }
 0x3cf   : > { %vm975_vm12 = vmor %vm973_vm11, %vm974_vm10 }
 0x3d0   : > { %v969_v7 = vmul.f32 %v1524_v2, %v968_v3  ;;  %v966_v8 = vsel %vm965_vm9, %v1522_v50, %v962_v4 }
 0x3d1   : > { %v991_v9 = vmul.f32 %v982_v24, %v966_v8 }
 0x3d2   : > { %v970_v10 = vmul.f32 0.5, %v969_v7 }
 0x3d3   : > { %1005 = vperm.xlu0 %1511, %v991_v9  }
 0x3d4   : > { %v971_v13 = vsub.f32 1.5, %v970_v10 }
 0x3d6   : > { %v972_v14 = vmul.f32 %v1524_v2, %v971_v13 }
 0x3d8   : > { %v976_v15 = vsel %vm975_vm12, %v1524_v2, %v972_v14 }
 0x3d9   : > { %v992_v61 = vmul.f32 %v984_v37, %v976_v15 }
 0x3db   : > { %1513 = vset.pattern.permute.xlu0 %v1825_v18  ;;  %1010 = vperm.xlu1 %1507, %v992_v61  }
 0x3dc   : > { %1022 = vperm.xlu0 %1513, %v2143_v33  }
 0x3e3   : > { %1512 = vset.pattern.permute.xlu1 %v1825_v18 }
 0x3e4   : > { %1026 = vperm.xlu1 %1512, %v2121_v28   ;;  %1516 = vset.pattern.permute.xlu0 %v1826_v32 }
 0x3e5   : > { %1062 = vperm.xlu0 %1516, %v2148_v34  }
 0x3ec   : > { %1515 = vset.pattern.permute.xlu1 %v1826_v32 }
 0x3ed   : > { %1058 = vperm.xlu1 %1515, %v2121_v28  }
 0x418   : > { %v1055_v29 = vpop.permute.xlu2 %1054 }
 0x420   : > { %v1067_v1 = vpop.permute.xlu2 %1066 }
 0x435   : > { %v996_v62 = vpop.permute.xlu1 %995 }
 0x436   : > { %v1013_v36 = vmul.f32 %v996_v62, %v2211_v11  ;;  %v1014_v37 = vmul.f32 %v996_v62, %v2214_v12  ;;  %v512_v11 = vld [vmem:[#allocation11] sm:$0xff]  ;;  %v515_v12 = vld [vmem:[#allocation11 + $0x18] sm:$0xff] }
 0x43d   : > { %v1001_v17 = vpop.permute.xlu1 %1000 }
 0x43e   : > { %v1015_v38 = vmul.f32 %v1001_v17, %v2186_v55  ;;  %v1016_v28 = vmul.f32 %v1001_v17, %v2188_v56  ;;  %v513_v55 = vld [vmem:[#allocation11 + $0x8] sm:$0xff]  ;;  %v514_v56 = vld [vmem:[#allocation11 + $0x10] sm:$0xff] }
 0x445   : > { %v1006_v19 = vpop.permute.xlu0 %1005 }
 0x446   : > { %v1017_v20 = vmul.f32 %v1006_v19, %v2194_v63  ;;  %v1018_v21 = vmul.f32 %v1006_v19, %v2196_v0 }
 0x448   : > { %v1041_v26 = vadd.f32 %v1031_v16, %v1017_v20  ;;  %v1042_v27 = vadd.f32 %v1031_v16, %v1018_v21 }
 0x44d   : > { %v1011_v22 = vpop.permute.xlu1 %1010 }
 0x44e   : > { %v1019_v24 = vmul.f32 %v1011_v22, %v2202_v5  ;;  %v1020_v25 = vmul.f32 %v1011_v22, %v2204_v6  ;;  %v1023_v0 = vpop.permute.xlu0 %1022  ;;  %v1049_v5 = vmax.f32 %v1041_v26, 0.0  ;;  %v1050_v6 = vmax.f32 %v1042_v27, 0.0 }
 0x44f   : > { %v1037_v34 = vadd.f32 %v1023_v0, %v1013_v36  ;;  %v1038_v40 = vadd.f32 %v1023_v0, %v1014_v37 }
 0x450   : > { %v1043_v31 = vadd.f32 %v1035_v23, %v1019_v24  ;;  %v1044_v18 = vadd.f32 %v1035_v23, %v1020_v25 }
 0x451   : > { %v1045_v30 = vmax.f32 %v1037_v34, 0.0  ;;  %v1046_v44 = vmax.f32 %v1038_v40, 0.0 }
 0x452   : > { %v1051_v63 = vmax.f32 %v1043_v31, 0.0  ;;  %v1052_v35 = vmax.f32 %v1044_v18, 0.0 }
 0x454   : > { %1093 = vmatpush.msra.mxu0 %v1051_v63  ;;  %1122 = vmatpush.msra.mxu1 %v1052_v35 }
 0x456   : > { %v1027_v39 = vpop.permute.xlu1 %1026  ;;  %1094 = vmatpush.msra.mxu0 %v1049_v5  ;;  %1123 = vmatpush.msra.mxu1 %v1050_v6 }
 0x457   : > { %v1039_v41 = vadd.f32 %v1027_v39, %v1015_v38  ;;  %v1040_v33 = vadd.f32 %v1027_v39, %v1016_v28  ;;  %v1063_v54 = vpop.permute.xlu0 %1062 }
 0x459   : > { %v1047_v42 = vmax.f32 %v1039_v41, 0.0  ;;  %v1048_v43 = vmax.f32 %v1040_v33, 0.0 }
 0x45b   : > { %1095 = vmatpush.msra.mxu0 %v1047_v42  ;;  %1124 = vmatpush.msra.mxu1 %v1048_v43 }
 0x45d   : > { %1096 = vmatpush.msra.mxu0 %v1045_v30  ;;  %1125 = vmatpush.msra.mxu1 %v1046_v44 }
 0x45e   : > { %1374 = vmatmul.msk.f32.vlgmr.msra.gmra.mxu0 %vm548_vm0, %v512_v11  ;;  %1378 = vmatmul.msk.f32.vlgmr.msra.gmra.mxu1 %vm548_vm0, %v512_v11 }
 0x45f   : > { %v1059_v49 = vpop.permute.xlu1 %1058 }
 0x466   : > { %1375 = vmatmul.msk.f32.gmra.mxu0 %vm548_vm0, %v513_v55  ;;  %1379 = vmatmul.msk.f32.gmra.mxu1 %vm548_vm0, %v513_v55 }
 0x46e   : > { %1376 = vmatmul.msk.f32.gmra.mxu0 %vm548_vm0, %v514_v56  ;;  %1380 = vmatmul.msk.f32.gmra.mxu1 %vm548_vm0, %v514_v56 }
 0x476   : > { %1377 = vmatmul.msk.f32.gmra.mxu0 %vm548_vm0, %v515_v12  ;;  %1381 = vmatmul.msk.f32.gmra.mxu1 %vm548_vm0, %v515_v12 }
 0x4db   : > { %v1098_v45 = vpop.f32.mrf.mxu0  ;;  %v1127_v46 = vpop.f32.mrf.mxu1 }
 0x4dc   : > { %v1099_v47 = vadd.f32 %v1098_v45, %v1055_v29  ;;  %v1128_v48 = vadd.f32 %v1127_v46, %v1055_v29 }
 0x4de   : > { %1139 = vst [vmem:[%s499_s29] sm:$0xff] %v1099_v47 }
 0x4df   : > { %1140 = vst [vmem:[%s499_s29 + $0x8] sm:$0xff] %v1128_v48 }
 0x4e3   : > { %v1101_v50 = vpop.f32.mrf.mxu0  ;;  %v1130_v51 = vpop.f32.mrf.mxu1 }
 0x4e4   : > { %v1102_v52 = vadd.f32 %v1101_v50, %v1059_v49  ;;  %v1131_v53 = vadd.f32 %v1130_v51, %v1059_v49 }
 0x4e6   : > { %1141 = vst [vmem:[%s499_s29 + $0x10] sm:$0xff] %v1102_v52 }
 0x4e7   : > { %1142 = vst [vmem:[%s499_s29 + $0x18] sm:$0xff] %v1131_v53 }
 0x4eb   : > { %v1104_v57 = vpop.f32.mrf.mxu0  ;;  %v1133_v58 = vpop.f32.mrf.mxu1 }
 0x4ec   : > { %v1105_v59 = vadd.f32 %v1104_v57, %v1063_v54  ;;  %v1134_v60 = vadd.f32 %v1133_v58, %v1063_v54 }
 0x4ee   : > { %1143 = vst [vmem:[%s499_s29 + $0x20] sm:$0xff] %v1105_v59 }
 0x4ef   : > { %1144 = vst [vmem:[%s499_s29 + $0x28] sm:$0xff] %v1134_v60 }
 0x4f3   : > { %v1107_v2 = vpop.f32.mrf.mxu0  ;;  %v1136_v3 = vpop.f32.mrf.mxu1 }
 0x4f4   : > { %v1108_v4 = vadd.f32 %v1107_v2, %v1067_v1  ;;  %v1137_v7 = vadd.f32 %v1136_v3, %v1067_v1 }
 0x4f6   : > { %1145 = vst [vmem:[%s499_s29 + $0x30] sm:$0xff] %v1108_v4 }
 0x4f7   : > { %1146 = vst [vmem:[%s499_s29 + $0x38] sm:$0xff] %v1137_v7 }
 0x4f8   : > { %1762 = shalt.err (!%p1759_p13)
}
 0x4f9   : > { %s1827_s25 = smov 256   ;;  %s1828_s21 = smov 16  }
 0x4fa   : > { %1421 = dma.vmem_to_hbm [thread:$0]  (%p1959_p3), %s1161_s17, 1024, %s1163_s30, %s1148_s13, %s1827_s25, %s1827_s25, %s1828_s21  }
 0x4fb PF: > { %s2347_s22 = sld [smem:[#allocation20_spill]] }
 0x4fc   : > { %s2349_s20 = sld [smem:[#allocation21_spill]] }
 0x501   : > { %s1177_s24 = sand.u32 1, %s2347_s22  }
 0x502   : > { %p2350_p0 = scmp.ge.s32.totalorder %s2349_s20, 2  ;;  %s1178_s29 = scalar_lea.sflag [#allocation4], %s1177_s24 }
 0x504   : > { %p1447_p8 = pnand %p2350_p0, %p1914_p6 }
 0x506   : > { %p1448_p9 = pneg %p1447_p8 }
 0x508   : > { %1796 = dma.done.wait (%p1448_p9), %s1178_s29, 1024  }
 0x509   : > { %1798 = vsyncadd (%p1448_p9), %s1178_s29, 4294966272  ;;  %s2351_s12 = sld [smem:[#allocation23_spill]]  ;;  %s2353_s30 = smov %s1805_s10 }
 0x50a   : > { %s2352_s15 = sld [smem:[#allocation25_spill]]  ;;  %s2354_s10 = smov %s1809_s11 }
 0x50f   : > { %p27_p12 = scmp.ge.s32.totalorder %s2351_s12, 4  }
 0x510   : > { %s2355_s11 = smov %s2352_s15 }
 0x511   :  { %29 = sbr.rel (!%p27_p12) target bundleno = 13 (0xd), region = 141 }
 0x516   :  { %1184 = vsyncpa [#allocation3], 1 }
 0x517   :  { %1186 = vsyncpa [#allocation3 + $0x1], 1 }
 0x518   :  { %1187 = vsyncpa [#allocation6], 1 }
 0x519   :  { %1189 = vsyncpa [#allocation6 + $0x1], 1 }
 0x51a   :  { %1190 = vsyncpa [#allocation9], 1 }
 0x51b   :  { %1191 = vsyncpa [#allocation12], 1 }
 0x51c   :  { %1192 = vsyncpa [#allocation4], 1 }
 0x51d   :  { %1194 = vsyncpa [#allocation4 + $0x1], 1 }

</bundles_post_ra>
